<compile_context>
chip_gen: v7x
topology: tpu7x:2x2x1
jax: 0.10.0
libtpu: 0.0.40
codegen_flags: <defaults>
</compile_context>

<pallas_src>
import functools

import jax
import jax.numpy as jnp
from jax.experimental import pallas as pl
from jax.experimental.pallas import tpu as pltpu


def _round_up(x, m):
    return ((x + m - 1) // m) * m


def _pick_tiling(n):
    """Return (Np, tile_m): padded node count and dst-node tile size.

    Small graphs: single tile, pad only to the bf16 sublane quantum (16).
    Large graphs: pad to a multiple of 128 (bounded padding waste on the dominant
    A stream) and pick the largest tile in {512, 256, 128} that divides Np while
    keeping >= 2 dst tiles (so the megacore-parallel axis has work on v7x).
    """
    if n <= 256:
        p = _round_up(n, 16)
        return p, p
    p = _round_up(n, 128)
    for t in (512, 256, 128):
        if p % t == 0 and p // t >= 2:
            return p, t
    return p, 128


def _vmem_limit_bytes():
    # Size the scoped-VMEM limit from the actual chip (64 MiB on v7x, 128 MiB on
    # v5e/v6e), leaving ~25% headroom; conservative fallback if the query fails.
    try:
        info = pltpu.get_tpu_info()
        cap = getattr(info, "vmem_capacity_bytes", None)
        if cap:
            return int(cap) * 3 // 4
    except Exception:
        pass
    return 48 * 1024 * 1024


# ----------------------- projection: XW[r] = X @ W[r] (bf16 out) ---------------

def _proj_kernel(x_ref, w_ref, o_ref):
    o_ref[0] = jnp.dot(
        x_ref[...], w_ref[0], preferred_element_type=jnp.float32
    ).astype(o_ref.dtype)


def _project_per_relation(x, w_rel, tile_m):
    """x: (Np, Din) f32, w_rel: (R, Din, Dp) f32 -> XW (R, Np, Dp) bf16."""
    Np, Din = x.shape
    R, _, Dp = w_rel.shape
    n_tiles = Np // tile_m
    return pl.pallas_call(
        _proj_kernel,
        out_shape=jax.ShapeDtypeStruct((R, Np, Dp), jnp.bfloat16),
        grid_spec=pltpu.PrefetchScalarGridSpec(
            num_scalar_prefetch=0,
            grid=(R, n_tiles),  # relations outer -> W[r] resident across dst tiles
            in_specs=[
                pl.BlockSpec((tile_m, Din), lambda r, i: (i, 0)),     # X tile
                pl.BlockSpec((1, Din, Dp), lambda r, i: (r, 0, 0)),   # W[r] (resident per r)
            ],
            out_specs=pl.BlockSpec((1, tile_m, Dp), lambda r, i: (r, i, 0)),
        ),
        compiler_params=pltpu.CompilerParams(
            dimension_semantics=("parallel", "parallel")),
    )(x, w_rel)


# --------------- aggregation: out = sum_r A[r] @ XW[r] + X @ Wself + b ---------

def _agg_kernel(x_ref, wself_ref, b_ref, a_ref, xw_ref, o_ref, *, apply_relu):
    r = pl.program_id(1)

    # First relation step: initialize the resident output block with self-loop + bias.
    @pl.when(r == 0)
    def _():
        o_ref[...] = (
            jnp.dot(x_ref[...], wself_ref[...], preferred_element_type=jnp.float32)
            + b_ref[...]
        )

    # Message passing for relation r on this dst-node tile:
    # bf16 A tile x bf16 XW[r] straight to the MXU, f32 accumulation into the
    # resident output block (relation axis is the innermost / "arbitrary" axis).
    o_ref[...] += jnp.dot(a_ref[0], xw_ref[r], preferred_element_type=jnp.float32)

    if apply_relu:
        @pl.when(r == pl.num_programs(1) - 1)
        def _():
            o_ref[...] = jnp.maximum(o_ref[...], 0.0)


def rel_graph_conv(x, adj_bf16, w_rel, w_self, b, *, apply_relu, tile_m):
    """One RelGraphConv layer on padded, lane-dense operands.

    x:        (Np, Din)     f32
    adj_bf16: (R, Np, Np)   bf16
    w_rel:    (R, Din, Dp)  f32   (Dp multiple of 128)
    w_self:   (Din, Dp)     f32
    b:        (1, Dp)       f32
    """
    Np, Din = x.shape
    R, _, Dp = w_rel.shape
    n_tiles = Np // tile_m

    # Hoisted per-relation projection (computed once per relation, bf16 output).
    xw = _project_per_relation(x, w_rel, tile_m)

    kernel = functools.partial(_agg_kernel, apply_relu=apply_relu)
    return pl.pallas_call(
        kernel,
        out_shape=jax.ShapeDtypeStruct((Np, Dp), jnp.float32),
        grid_spec=pltpu.PrefetchScalarGridSpec(
            num_scalar_prefetch=0,
            grid=(n_tiles, R),
            in_specs=[
                pl.BlockSpec((tile_m, Din), lambda i, r: (i, 0)),       # X dst tile (resident per i)
                pl.BlockSpec((Din, Dp), lambda i, r: (0, 0)),           # W_self (resident)
                pl.BlockSpec((1, Dp), lambda i, r: (0, 0)),             # bias (resident)
                pl.BlockSpec((1, tile_m, Np), lambda i, r: (r, i, 0)),  # A[r] rows, bf16 stream
                pl.BlockSpec((R, Np, Dp), lambda i, r: (0, 0, 0)),      # XW, fully resident (one DMA)
            ],
            # Output block constant across r -> acts as the accumulator (no scratch).
            out_specs=pl.BlockSpec((tile_m, Dp), lambda i, r: (i, 0)),
        ),
        compiler_params=pltpu.CompilerParams(
            dimension_semantics=("parallel", "arbitrary"),
            vmem_limit_bytes=_vmem_limit_bytes()),
    )(x, w_self, b, adj_bf16, xw)


def rgcn_forward(adj, features, params):
    """RGCN.forward: h = relu(layer1(g, x, etypes)); logits = layer2(g, h, etypes)."""
    R, N, _ = adj.shape
    hidden = params["w1"].shape[-1]
    out_dim = params["w2"].shape[-1]

    Np, tile_m = _pick_tiling(N)
    Hp = _round_up(hidden, 128)        # lane-dense hidden width
    Op = _round_up(out_dim, 128)       # lane-dense output width

    # Pad node axis; adjacency streamed as bf16 (exact for small integer edge counts).
    x = jnp.pad(features, ((0, Np - N), (0, 0)))
    a = jnp.pad(adj, ((0, 0), (0, Np - N), (0, Np - N))).astype(jnp.bfloat16)

    # Lane-dense weight padding; padded output columns are exactly zero.
    w1 = jnp.pad(params["w1"], ((0, 0), (0, 0), (0, Hp - hidden)))
    w1s = jnp.pad(params["w1_self"], ((0, 0), (0, Hp - hidden)))
    b1 = jnp.pad(params["b1"], ((0, 0), (0, Hp - hidden)))
    # Layer 2 consumes the padded hidden features (extra columns are 0 after ReLU).
    w2 = jnp.pad(params["w2"], ((0, 0), (0, Hp - hidden), (0, Op - out_dim)))
    w2s = jnp.pad(params["w2_self"], ((0, Hp - hidden), (0, Op - out_dim)))
    b2 = jnp.pad(params["b2"], ((0, 0), (0, Op - out_dim)))

    h = rel_graph_conv(x, a, w1, w1s, b1, apply_relu=True, tile_m=tile_m)
    logits = rel_graph_conv(h, a, w2, w2s, b2, apply_relu=False, tile_m=tile_m)
    return logits[:N, :out_dim]


def init_params(key, in_dim, hidden_dim, out_dim, rel_num):
    ks = jax.random.split(key, 4)

    def glorot(k, shape):
        fan_in, fan_out = shape[-2], shape[-1]
        scale = jnp.sqrt(6.0 / (fan_in + fan_out))
        return jax.random.uniform(k, shape, jnp.float32, -scale, scale)

    return {
        "w1": glorot(ks[0], (rel_num, in_dim, hidden_dim)),
        "w1_self": glorot(ks[1], (in_dim, hidden_dim)),
        "b1": jnp.zeros((1, hidden_dim), jnp.float32),
        "w2": glorot(ks[2], (rel_num, hidden_dim, out_dim)),
        "w2_self": glorot(ks[3], (hidden_dim, out_dim)),
        "b2": jnp.zeros((1, out_dim), jnp.float32),
    }


def build_dense_adjacency(src, dst, edge_types, num_nodes, rel_num):
    # Glue (plain JAX): scatter the edge list into dense per-relation adjacency.
    # Multi-edges are summed (one message per edge, matching DGL multigraph semantics).
    adj = jnp.zeros((rel_num, num_nodes, num_nodes), jnp.float32)
    adj = adj.at[edge_types, dst, src].add(1.0)
    return adj


if __name__ == "__main__":
    key = jax.random.PRNGKey(0)
    k_graph, k_feat, k_param = jax.random.split(key, 3)

    # Small deterministic problem.
    num_nodes, in_dim, hidden_dim, out_dim, rel_num = 16, 8, 16, 8, 3
    num_edges = 40

    ke1, ke2, ke3 = jax.random.split(k_graph, 3)
    src = jax.random.randint(ke1, (num_edges,), 0, num_nodes)
    dst = jax.random.randint(ke2, (num_edges,), 0, num_nodes)
    edge_types = jax.random.randint(ke3, (num_edges,), 0, rel_num)
    adj = build_dense_adjacency(src, dst, edge_types, num_nodes, rel_num)

    features = jax.random.normal(k_feat, (num_nodes, in_dim), jnp.float32)
    params = init_params(k_param, in_dim, hidden_dim, out_dim, rel_num)

    logits = rgcn_forward(adj, features, params)
    jax.block_until_ready(logits)

    # Pure-JAX reference check (mirrors the kernel's internal precision:
    # per-relation projections rounded to bf16 before aggregation; A entries are
    # small integers, exact in bf16).
    def ref_layer(x, w_rel, w_self, b):
        xw = jnp.einsum("nd,rde->rne", x, w_rel)
        xw = xw.astype(jnp.bfloat16).astype(jnp.float32)
        msg = jnp.einsum("rij,rje->ie", adj, xw)
        return msg + x @ w_self + b

    h_ref = jnp.maximum(
        ref_layer(features, params["w1"], params["w1_self"], params["b1"]), 0.0)
    ref = ref_layer(h_ref, params["w2"], params["w2_self"], params["b2"])
    assert logits.shape == (num_nodes, out_dim)
    assert jnp.allclose(logits, ref, atol=2e-2, rtol=2e-2), float(
        jnp.max(jnp.abs(logits - ref)))

    print("KERNEL_OK")
</pallas_src>

<mosaic_0001>
module attributes {stable_mosaic.version = 11 : i64} {
  func.func @_proj_kernel(%arg0: i32, %arg1: i32, %arg2: memref<16x8xf32, #tpu.memory_space<vmem>>, %arg3: memref<1x8x128xf32, #tpu.memory_space<vmem>>, %arg4: memref<1x16x128xbf16, #tpu.memory_space<vmem>>) attributes {dimension_semantics = [#tpu.dimension_semantics<parallel>, #tpu.dimension_semantics<parallel>], iteration_bounds = array<i64: 3, 1>, scalar_prefetch = 0 : i64, scratch_operands = 0 : i64, tpu.core_type = #tpu.core_type<tc>, window_params = [{transform_indices = @transform_0, window_bounds = array<i64: 16, 8>}, {transform_indices = @transform_1, window_bounds = array<i64: 1, 8, 128>}, {transform_indices = @transform_2, window_bounds = array<i64: 1, 16, 128>}]} {
    %c0 = arith.constant 0 : index
    %c0_0 = arith.constant 0 : index
    %0 = vector.load %arg2[%c0, %c0_0] : memref<16x8xf32, #tpu.memory_space<vmem>>, vector<16x8xf32>
    %c0_1 = arith.constant 0 : index
    %c0_2 = arith.constant 0 : index
    %c0_3 = arith.constant 0 : index
    %1 = vector.load %arg3[%c0_1, %c0_2, %c0_3] : memref<1x8x128xf32, #tpu.memory_space<vmem>>, vector<1x8x128xf32>
    %2 = vector.shape_cast %1 : vector<1x8x128xf32> to vector<8x128xf32>
    %cst = arith.constant dense<0.000000e+00> : vector<16x128xf32>
    %3 = tpu.matmul %0, %2, %cst {dimension_numbers = #tpu.dot_dimension_numbers<[1], [0], [0], [1], [0, 0, 1, 1], [], []>} : vector<16x8xf32>, vector<8x128xf32>, vector<16x128xf32> -> vector<16x128xf32>
    %4 = arith.truncf %3 : vector<16x128xf32> to vector<16x128xbf16>
    %c0_4 = arith.constant 0 : index
    %c0_5 = arith.constant 0 : index
    %c0_6 = arith.constant 0 : index
    %5 = vector.load %arg4[%c0_4, %c0_5, %c0_6] : memref<1x16x128xbf16, #tpu.memory_space<vmem>>, vector<1x16x128xbf16>
    %6 = vector.shape_cast %5 : vector<1x16x128xbf16> to vector<16x128xbf16>
    %7 = vector.shape_cast %4 : vector<16x128xbf16> to vector<1x16x128xbf16>
    tpu.vector_store %arg4[%c0_4, %c0_5, %c0_6], %7 {strides = array<i32>} : memref<1x16x128xbf16, #tpu.memory_space<vmem>>, vector<1x16x128xbf16>,
    return
  }
  func.func @transform_0(%arg0: i32, %arg1: i32) -> (i32, i32) {
    %c0_i32 = arith.constant 0 : i32
    %c0_i32_0 = arith.constant 0 : i32
    return %arg1, %c0_i32 : i32, i32
  }
  func.func @transform_1(%arg0: i32, %arg1: i32) -> (i32, i32, i32) {
    %c0_i32 = arith.constant 0 : i32
    %c0_i32_0 = arith.constant 0 : i32
    %c0_i32_1 = arith.constant 0 : i32
    return %arg0, %c0_i32, %c0_i32_0 : i32, i32, i32
  }
  func.func @transform_2(%arg0: i32, %arg1: i32) -> (i32, i32, i32) {
    %c0_i32 = arith.constant 0 : i32
    %c0_i32_0 = arith.constant 0 : i32
    return %arg0, %arg1, %c0_i32 : i32, i32, i32
  }
}

</mosaic_0001>

<bundles_post_ra>
// kernel: tpu_custom_call.1
= control target key start
LH: loop header
LB: loop body
LE: loop exit
PB: predicated region body
PF: predicated region fallthrough
CT: control target
= control target key end

     0   :  { %7 = vsyncpa [#allocation3], 0  ;;  %s684_s0 = inlined_call_operand.vmem [shape: f32[16,8], index: 0, kind: input, shape index: {}]   ;;  %s685_s1 = inlined_call_operand.vmem [shape: f32[3,8,128], index: 1, kind: input, shape index: {}]   ;;  %s686_s2 = inlined_call_operand.hbm [shape: bf16[3,16,128], index: 2, kind: output, shape index: {}]  }
   0x1   :  { %9 = vsyncpa [#allocation3 + $0x1], 0  ;;  %s563_s9 = smov 0   ;;  %s565_s10 = smov 0  }
   0x2   :  { %s567_s11 = smov 0   ;;  %s569_s12 = smov 0  }
   0x3   :  { %s571_s13 = smov 0   ;;  %s573_s14 = smov 0  }
   0x4 LB: > { %s375_s15 = sadd.s32 4294967295, %s543_s14   ;;  %s376_s16 = sadd.s32 4294967294, %s543_s14   ;;  %s543_s14 = sphi %s573_s14, %s15_s14   ;;  %s539_s13 = sphi %s571_s13, %s693_s13   ;;  %s535_s12 = sphi %s569_s12, %s692_s12   ;;  %s531_s11 = sphi %s567_s11, %s691_s11   ;;  %s527_s10 = sphi %s565_s10, %s690_s10   ;;  %s523_s9 = sphi %s563_s9, %s689_s9  }
   0x5   : > { %s27_s17 = sadd.s32 1, %s539_s13  ;;  %s88_s18 = sadd.s32 1, %s531_s11 }
   0x6   : > { %p29_p0 = scmp.ge.s32.totalorder %s27_s17, 3  ;;  %p98_p1 = scmp.ne.s32.totalorder %s531_s11, %s527_s10 }
   0x7   : > { %p99_p2 = scmp.eq.s32.totalorder %s375_s15, 2  ;;  %p104_p3 = scmp.ne.s32.totalorder %s527_s10, %s523_s9 }
   0x8   : > { %s695_s17 = smov (%p29_p0, %s27_s17), 0  ;;  %p105_p5 = scmp.eq.s32.totalorder %s376_s16, 2 }
   0x9   : > { %p603_p4 = por %p99_p2, %p98_p1  ;;  %s83_s20 = ssub.s32 %s539_s13, %s695_s17 }
   0xa   : > { %p380_p6 = scmp.ge.s32.totalorder %s543_s14, 1  ;;  %p86_p7 = scmp.eq.s32.totalorder %s83_s20, 0 }
   0xb   : > { %p610_p8 = por %p105_p5, %p104_p3  ;;  %p139_p9 = scmp.lt.s32.totalorder %s543_s14, 4 }
   0xc   : > { %s616_s22 = scalar_select %p86_p7, %s531_s11, %s88_s18  }
   0xd   : > { %p140_p10 = pnand %p380_p6, %p139_p9 }
   0xe   : > { %p171_p11 = scmp.lt.s32.totalorder (!%p140_p10), %s535_s12, 2  ;;  %v176_v0 = vld [vmem:[%s684_s0] sm:$0xff] (!%p140_p10)  ;;  %vm179_vm0 = vcmask (!%p140_p10), 64512   ;;  %v177_v2 = vld [vmem:[%s684_s0 + $0x8] sm:$0xff] (!%p140_p10)  ;;  %s162_s4 = sand.u32 (!%p140_p10), 1, %s527_s10  }
   0xf   : > { %143 = sbr.rel (%p140_p10) target bundleno = 259 (0x103), region = 28  ;;  %405 = vmatprep.mubr.msk.f32.mxu0 (!%p140_p10), %vm179_vm0, %v176_v0  ;;  %s381_s5 = sshll.u32 (!%p140_p10), %s162_s4, 3 }
  0x10   : > { %s164_s6 = scalar_lea.vmem (!%p140_p10), [#allocation2], %s381_s5  ;;  %s394_s8 = sshll.u32 (!%p140_p10), %s535_s12, 7 }
  0x11   : > { %s287_s7 = sshll.u32 (!%p140_p10), %s164_s6, 4  ;;  %s636_s18 = scalar_lea.hbm (!%p140_p10), %s686_s2, %s394_s8  ;;  %s631_s7 = int_to_ptr.vmem [resolvable:$true] %s287_s7 }
  0x12   : > { %s638_s20 = scalar_lea.sflag (!%p140_p10), [#allocation3], %s162_s4  ;;  %s465_s23 = scalar_lea.vmem (!%p140_p10), %s631_s7, 128 }
  0x13   : > { %p466_p12 = scmp.ne.s32.totalorder (!%p140_p10), %s631_s7, %s465_s23 }
  0x15   : > { %p467_p13 = pnand (!%p140_p10), %p466_p12, %p603_p4 }
  0x16   : > { %s172_s25 = scalar_select %p171_p11, %s535_s12, 2 }
  0x17   : > { %p468_p0 = pneg %p467_p13  ;;  %s545_s12 = smov [#allocation2]  }
  0x18   : > { %s382_s26 = sshll.u32 %s172_s25, 3  ;;  %s469_s24 = sshll.u32 %s545_s12, 4  ;;  %s470_s24 = int_to_ptr.vmem [resolvable:$false] %s469_s24 }
  0x19   : > { %s174_s29 = scalar_lea.vmem %s685_s1, %s382_s26  ;;  %s471_s25 = scalar_lea.vmem %s470_s24, 256 }
  0x1a   : > { %v178_v1 = vld [vmem:[%s174_s29] sm:$0xff]  ;;  %p472_p1 = scmp.lt.s32.totalorder %s631_s7, %s470_s24  ;;  %p473_p2 = scmp.lt.s32.totalorder %s471_s25, %s465_s23 }
  0x1b   : > { %403 = vmatprep.subr.mxu0 %v178_v1 }
  0x1c   : > { %404 = vmatpush3.msra.mxu0 %v178_v1  ;;  %p474_p3 = por %p473_p2, %p472_p1 }
  0x1d   : > { %406 = vmatmul.mubr.msk.f32.vlgmr.msra.gmra.mrb[0].mxu0 %vm179_vm0, %v177_v2 }
  0x1e   : > { %p475_p5 = pnand %p474_p3, %p468_p0 }
  0xf0   : > { %v407_v3 = vpop.f32.mrb[0].mxu0 }
  0xf1   : > { %v252_v4 = vpop.f32.mrb[1].mxu0 }
  0xf2   : > { %v398_v5 = vpack.c.bf16 %v407_v3, %v252_v4 }
  0xf4   : > { %399 = vst [vmem:[%s164_s6] sm:$0xff] %v398_v5  }
  0xf5   : > { %478 = shalt.err (!%p475_p5)
}
  0xf6   : > { %s479_s26 = scalar_lea.hbm %s636_s18, 128  ;;  %s483_s29 = scalar_lea.hbm %s686_s2, 384 }
  0xf7   : > { %p480_p6 = scmp.ne.s32.totalorder %s636_s18, %s479_s26  ;;  %p484_p10 = scmp.lt.u32.totalorder %s636_s18, %s686_s2 }
  0xf8   : > { %p485_p11 = scmp.lt.u32.totalorder %s483_s29, %s479_s26  ;;  %p487_p13 = scmp.lt.u32.totalorder %s479_s26, %s636_s18 }
  0xf9   : > { %p481_p7 = pnand %p480_p6, %p603_p4 }
  0xfa   : > { %p486_p12 = por %p485_p11, %p484_p10 }
  0xfb   : > { %p482_p9 = pneg %p481_p7 }
  0xfc   : > { %p488_p0 = por %p487_p13, %p486_p12 }
  0xfe   : > { %p489_p1 = pnand %p488_p0, %p482_p9 }
 0x100   : > { %492 = shalt.err (!%p489_p1)
}
 0x101   : > { %s546_s4 = smov 64   ;;  %s547_s5 = smov 4  }
 0x102   : > { %408 = dma.vmem_to_hbm [thread:$0]  (%p603_p4), %s631_s7, 128, %s636_s18, %s638_s20, %s546_s4, %s546_s4, %s547_s5  }
 0x103 PF: > { %p414_p2 = scmp.ge.s32.totalorder %s543_s14, 2  ;;  %s302_s6 = sand.u32 1, %s523_s9  }
 0x104   : > { %s303_s8 = scalar_lea.sflag [#allocation3], %s302_s6 }
 0x105   : > { %p411_p3 = pnand %p414_p2, %p610_p8 }
 0x107   : > { %518 = dma.done.wait (!%p411_p3), %s303_s8, 128  }
 0x108   : > { %520 = vsyncadd (!%p411_p3), %s303_s8, 4294967168  ;;  %s15_s14 = sadd.s32 1, %s543_s14   ;;  %s689_s9 = smov %s527_s10 }
 0x109   : > { %p12_p5 = scmp.ge.s32.totalorder %s15_s14, 5   ;;  %s690_s10 = smov %s531_s11 }
 0x10a   : > { %s691_s11 = smov %s616_s22  ;;  %s692_s12 = smov %s539_s13 }
 0x10b   : > { %s693_s13 = smov %s695_s17  ;;  %14 = sbr.rel (!%p12_p5) target bundleno = 4 (0x4), region = 66 }
 0x112   :  { %308 = vsyncpa [#allocation3], 1 }
 0x113   :  { %310 = vsyncpa [#allocation3 + $0x1], 1 }

</bundles_post_ra>
